<compile_context>
chip_gen: v6e
topology: v6e:2x2x1
jax: 0.10.0
libtpu: 0.0.40
codegen_flags: <defaults>
</compile_context>

<pallas_src>
import jax
import jax.numpy as jnp
from jax.experimental import pallas as pl
from jax.experimental.pallas import tpu as pltpu


def _round_up(x: int, m: int) -> int:
    return -(-x // m) * m


def _cdiv(a: int, b: int) -> int:
    return -(-a // b)


def _vmem_budget_bytes() -> int:
    """Generation-aware VMEM budget: half of physical capacity, >= 32 MiB fallback."""
    try:
        cap = int(pltpu.get_tpu_info().vmem_capacity_bytes)
        return max(cap // 2, 16 << 20)
    except Exception:
        # Conservative default that is safe on v7x (64 MiB physical) and below.
        return 32 << 20


def _choose_tiles(B: int, C_in: int, C_out: int, T: int, itemsize: int, vmem_budget: int):
    """Pick (BB, TT, vmem_limit) from an explicit VMEM budget.

    Accounts for sublane padding: a (C_in, TT) f32 tile occupies
    (ceil(C_in/8)*8, TT) in VMEM, likewise for the output.
    """
    cin_rows = _round_up(C_in, 8)
    cout_rows = _round_up(C_out, 8)
    col_bytes = (cin_rows + cout_rows) * itemsize  # bytes per (batch row, time column)

    # Resident weight + bias footprint (layout-padded, assume double-buffered).
    resident = 2 * (cout_rows * _round_up(C_in, 128) + cout_rows * 128) * itemsize
    tile_budget = max(vmem_budget - resident, 1 << 20)

    # ---- Time tile: biggest lane-dense tile that fits double-buffered. ----
    T_pad = _round_up(T, 128)
    tt_cap_cols = tile_budget // (2 * col_bytes)  # max padded columns at BB=1
    if T_pad <= max(tt_cap_cols, 128):
        TT = T            # whole time axis in one block (full dim -> always legal)
        tt_pad = T_pad    # padded footprint used for budgeting
    else:
        TT = max(128, (tt_cap_cols // 128) * 128)
        tt_pad = TT
    t_steps = _cdiv(T, TT)

    # ---- Batch block: fold rows until each step moves ~2 MiB of HBM traffic,
    #      within VMEM, keeping >=2 grid steps (megacore) when possible. ----
    target_step_bytes = 2 << 20
    max_bb = min(B, 8)  # bounds the static unroll inside the kernel
    BB = 1
    while BB < max_bb:
        if BB * tt_pad * col_bytes >= target_step_bytes:
            break
        nb = BB + 1
        if 2 * nb * tt_pad * col_bytes > tile_budget:
            break
        if _cdiv(B, nb) * t_steps < 2:
            break
        BB = nb

    return BB, TT, int(vmem_budget)


def _make_pointwise_kernel(BB: int):
    def kernel(x_ref, w_ref, b_ref, o_ref):
        # x_ref: (BB, C_in, TT)  w_ref: (C_out, C_in)  b_ref: (C_out, 1)
        # o_ref: (BB, C_out, TT)
        w = w_ref[...]
        b = b_ref[...].astype(jnp.float32)          # (C_out, 1) broadcast over lanes
        for i in range(BB):                          # static unroll, BB <= 8
            acc = jnp.dot(w, x_ref[i], preferred_element_type=jnp.float32)
            o_ref[i] = (acc + b).astype(o_ref.dtype)
    return kernel


def pointwise_conv1d(x, weight, bias):
    """Pointwise (kernel_size=1, stride=1, padding=0) 1-D convolution.

    Args:
      x:      (B, C_in, T)   float32
      weight: (C_out, C_in)  float32   (Conv1d weight squeezed over the kernel dim)
      bias:   (C_out,)       float32
    Returns:
      (B, C_out, T) float32
    """
    B, C_in, T = x.shape
    C_out = weight.shape[0]
    b2d = bias.reshape(C_out, 1)

    BB, TT, vmem_limit = _choose_tiles(
        B, C_in, C_out, T, jnp.dtype(x.dtype).itemsize, _vmem_budget_bytes()
    )
    grid = (_cdiv(B, BB), _cdiv(T, TT))

    cost = pl.CostEstimate(
        flops=2 * B * T * C_in * C_out,
        transcendentals=0,
        bytes_accessed=(x.size + weight.size + bias.size + B * C_out * T)
        * jnp.dtype(x.dtype).itemsize,
    )

    return pl.pallas_call(
        _make_pointwise_kernel(BB),
        out_shape=jax.ShapeDtypeStruct((B, C_out, T), x.dtype),
        grid_spec=pltpu.PrefetchScalarGridSpec(
            num_scalar_prefetch=0,
            grid=grid,
            in_specs=[
                # Input tile: (BB, C_in, TT) -- C_in is the full dim, TT lane-dense.
                pl.BlockSpec((BB, C_in, TT), lambda b, t: (b, 0, t)),
                # Weight and bias: single block, resident in VMEM across the grid.
                pl.BlockSpec((C_out, C_in), lambda b, t: (0, 0)),
                pl.BlockSpec((C_out, 1), lambda b, t: (0, 0)),
            ],
            out_specs=pl.BlockSpec((BB, C_out, TT), lambda b, t: (b, 0, t)),
        ),
        compiler_params=pltpu.CompilerParams(
            # Every (b, t) step is independent -- no reduction axis in the grid.
            dimension_semantics=("parallel", "parallel"),
            vmem_limit_bytes=vmem_limit,
        ),
        cost_estimate=cost,
    )(x, weight, b2d)


def _reference(x, weight, bias):
    return jnp.einsum("oc,bct->bot", weight, x) + bias[None, :, None]


if __name__ == "__main__":
    key = jax.random.PRNGKey(0)

    # --- Case 1: module-consistent small shapes (batch, in_channels, time). ---
    batch, in_channels, time = 2, 4, 16
    out_channels = 8
    kx, kw, kb, key = jax.random.split(key, 4)
    x = jax.random.normal(kx, (batch, in_channels, time), dtype=jnp.float32)
    # nn.Conv1d default init: U(-k, k) with k = 1/sqrt(in_channels * kernel_size)
    k = 1.0 / jnp.sqrt(jnp.float32(in_channels * 1))
    weight = jax.random.uniform(kw, (out_channels, in_channels), minval=-k, maxval=k,
                                dtype=jnp.float32)
    bias = jax.random.uniform(kb, (out_channels,), minval=-k, maxval=k, dtype=jnp.float32)

    out = pointwise_conv1d(x, weight, bias)
    jax.block_until_ready(out)
    ref = _reference(x, weight, bias)
    assert out.shape == (batch, out_channels, time)
    assert jnp.allclose(out, ref, atol=1e-5, rtol=1e-5)

    # --- Case 2: ragged batch / non-multiple-of-8 channels / T > 128 (exercises
    #     the batch-folded unroll + ragged-tile masking path). ---
    b2, ci2, co2, t2 = 3, 5, 7, 200
    kx, kw, kb, key = jax.random.split(key, 4)
    x2 = jax.random.normal(kx, (b2, ci2, t2), dtype=jnp.float32)
    k2 = 1.0 / jnp.sqrt(jnp.float32(ci2))
    w2 = jax.random.uniform(kw, (co2, ci2), minval=-k2, maxval=k2, dtype=jnp.float32)
    bs2 = jax.random.uniform(kb, (co2,), minval=-k2, maxval=k2, dtype=jnp.float32)

    out2 = pointwise_conv1d(x2, w2, bs2)
    jax.block_until_ready(out2)
    ref2 = _reference(x2, w2, bs2)
    assert out2.shape == (b2, co2, t2)
    assert jnp.allclose(out2, ref2, atol=1e-5, rtol=1e-5)

    print("KERNEL_OK")
</pallas_src>

<mosaic_0001>
module attributes {stable_mosaic.version = 11 : i64} {
  func.func @kernel(%arg0: i32, %arg1: i32, %arg2: memref<1x4x16xf32, #tpu.memory_space<vmem>>, %arg3: memref<8x4xf32, #tpu.memory_space<vmem>>, %arg4: memref<8x1xf32, #tpu.memory_space<vmem>>, %arg5: memref<1x8x16xf32, #tpu.memory_space<vmem>>) attributes {dimension_semantics = [#tpu.dimension_semantics<parallel>, #tpu.dimension_semantics<parallel>], iteration_bounds = array<i64: 2, 1>, scalar_prefetch = 0 : i64, scratch_operands = 0 : i64, tpu.core_type = #tpu.core_type<tc>, window_params = [{transform_indices = @transform_0, window_bounds = array<i64: 1, 4, 16>}, {pipeline_mode = #tpu.pipeline_mode<synchronous>, transform_indices = @transform_1, window_bounds = array<i64: 8, 4>}, {pipeline_mode = #tpu.pipeline_mode<synchronous>, transform_indices = @transform_2, window_bounds = array<i64: 8, 1>}, {transform_indices = @transform_3, window_bounds = array<i64: 1, 8, 16>}]} {
    %c0 = arith.constant 0 : index
    %c0_0 = arith.constant 0 : index
    %0 = vector.load %arg3[%c0, %c0_0] : memref<8x4xf32, #tpu.memory_space<vmem>>, vector<8x4xf32>
    %c0_1 = arith.constant 0 : index
    %c0_2 = arith.constant 0 : index
    %1 = vector.load %arg4[%c0_1, %c0_2] : memref<8x1xf32, #tpu.memory_space<vmem>>, vector<8x1xf32>
    %c0_3 = arith.constant 0 : index
    %c0_4 = arith.constant 0 : index
    %c0_5 = arith.constant 0 : index
    %2 = vector.load %arg2[%c0_3, %c0_4, %c0_5] : memref<1x4x16xf32, #tpu.memory_space<vmem>>, vector<1x4x16xf32>
    %3 = vector.shape_cast %2 : vector<1x4x16xf32> to vector<4x16xf32>
    %cst = arith.constant dense<0.000000e+00> : vector<8x16xf32>
    %4 = tpu.matmul %0, %3, %cst {dimension_numbers = #tpu.dot_dimension_numbers<[1], [0], [0], [1], [0, 0, 1, 1], [], []>} : vector<8x4xf32>, vector<4x16xf32>, vector<8x16xf32> -> vector<8x16xf32>
    %5 = vector.broadcast %1 : vector<8x1xf32> to vector<8x16xf32>
    %6 = arith.addf %4, %5 : vector<8x16xf32>
    %c0_6 = arith.constant 0 : index
    %c0_7 = arith.constant 0 : index
    %c0_8 = arith.constant 0 : index
    %7 = vector.load %arg5[%c0_6, %c0_7, %c0_8] : memref<1x8x16xf32, #tpu.memory_space<vmem>>, vector<1x8x16xf32>
    %8 = vector.shape_cast %7 : vector<1x8x16xf32> to vector<8x16xf32>
    %9 = vector.shape_cast %6 : vector<8x16xf32> to vector<1x8x16xf32>
    tpu.vector_store %arg5[%c0_6, %c0_7, %c0_8], %9 {strides = array<i32>} : memref<1x8x16xf32, #tpu.memory_space<vmem>>, vector<1x8x16xf32>,
    return
  }
  func.func @transform_0(%arg0: i32, %arg1: i32) -> (i32, i32, i32) {
    %c0_i32 = arith.constant 0 : i32
    %c0_i32_0 = arith.constant 0 : i32
    return %arg0, %c0_i32, %arg1 : i32, i32, i32
  }
  func.func @transform_1(%arg0: i32, %arg1: i32) -> (i32, i32) {
    %c0_i32 = arith.constant 0 : i32
    %c0_i32_0 = arith.constant 0 : i32
    %c0_i32_1 = arith.constant 0 : i32
    return %c0_i32, %c0_i32_0 : i32, i32
  }
  func.func @transform_2(%arg0: i32, %arg1: i32) -> (i32, i32) {
    %c0_i32 = arith.constant 0 : i32
    %c0_i32_0 = arith.constant 0 : i32
    %c0_i32_1 = arith.constant 0 : i32
    return %c0_i32, %c0_i32_0 : i32, i32
  }
  func.func @transform_3(%arg0: i32, %arg1: i32) -> (i32, i32, i32) {
    %c0_i32 = arith.constant 0 : i32
    %c0_i32_0 = arith.constant 0 : i32
    return %arg0, %c0_i32, %arg1 : i32, i32, i32
  }
}

</mosaic_0001>

<bundles_post_ra>
// kernel: tpu_custom_call.1
= control target key start
LH: loop header
LB: loop body
LE: loop exit
PB: predicated region body
PF: predicated region fallthrough
CT: control target
= control target key end

     0   :  { %8 = vsyncpa [#allocation3], 0  ;;  %s657_s0 = inlined_call_operand.vmem [shape: f32[2,4,16], index: 0, kind: input, shape index: {}]   ;;  %s658_s1 = inlined_call_operand.vmem [shape: f32[8,4], index: 1, kind: input, shape index: {}]   ;;  %s659_s2 = inlined_call_operand.vmem [shape: f32[8,1], index: 2, kind: input, shape index: {}]   ;;  %s660_s3 = inlined_call_operand.hbm [shape: f32[2,8,16], index: 3, kind: output, shape index: {}]  }
   0x1   :  { %10 = vsyncpa [#allocation3 + $0x1], 0  ;;  %s546_s12 = smov 0   ;;  %s548_s13 = smov 0  }
   0x2   :  { %s550_s14 = smov 0   ;;  %s552_s15 = smov 0  }
   0x3   :  { %s554_s16 = smov 0   ;;  %s556_s17 = smov 0  }
   0x4 LB: > { %s365_s18 = sadd.s32 4294967295, %s520_s17   ;;  %s366_s19 = sadd.s32 4294967294, %s520_s17   ;;  %s520_s17 = sphi %s556_s17, %s16_s17   ;;  %s516_s16 = sphi %s554_s16, %s667_s16   ;;  %s512_s15 = sphi %s552_s15, %s666_s15   ;;  %s508_s14 = sphi %s550_s14, %s665_s14   ;;  %s504_s13 = sphi %s548_s13, %s664_s13   ;;  %s500_s12 = sphi %s546_s12, %s663_s12  }
   0x5   : > { %s28_s20 = sadd.s32 1, %s516_s16  ;;  %s107_s21 = sadd.s32 1, %s508_s14 }
   0x6   : > { %p30_p0 = scmp.ge.s32.totalorder %s28_s20, 2  ;;  %p117_p1 = scmp.ne.s32.totalorder %s508_s14, %s504_s13 }
   0x7   : > { %p118_p2 = scmp.eq.s32.totalorder %s365_s18, 1  ;;  %p123_p3 = scmp.ne.s32.totalorder %s504_s13, %s500_s12 }
   0x8   : > { %s669_s20 = smov (%p30_p0, %s28_s20), 0  ;;  %p124_p5 = scmp.eq.s32.totalorder %s366_s19, 1 }
   0x9   : > { %p586_p4 = por %p118_p2, %p117_p1  ;;  %s102_s23 = ssub.s32 %s516_s16, %s669_s20 }
   0xa   : > { %p369_p6 = scmp.ge.s32.totalorder %s520_s17, 1  ;;  %p105_p7 = scmp.eq.s32.totalorder %s102_s23, 0 }
   0xb   : > { %p593_p8 = por %p124_p5, %p123_p3  ;;  %p158_p9 = scmp.lt.s32.totalorder %s520_s17, 3 }
   0xc   : > { %s599_s25 = scalar_select %p105_p7, %s508_s14, %s107_s21  }
   0xd   : > { %p159_p10 = pnand %p369_p6, %p158_p9 }
   0xe   : > { %p184_p11 = scmp.lt.s32.totalorder (!%p159_p10), %s512_s15, 1  ;;  %s181_s8 = sand.u32 (!%p159_p10), 1, %s504_s13  }
   0xf   : > { %162 = sbr.rel (%p159_p10) target bundleno = 234 (0xea), region = 32  ;;  %s370_s9 = sshll.u32 (!%p159_p10), %s181_s8, 3 }
  0x10   : > { %s375_s10 = sshll.u32 (!%p159_p10), %s512_s15, 7  ;;  %s183_s11 = scalar_lea.vmem (!%p159_p10), [#allocation2], %s370_s9 }
  0x11   : > { %s294_s18 = sshll.u32 (!%p159_p10), %s183_s11, 4  ;;  %s617_s23 = scalar_lea.hbm (!%p159_p10), %s660_s3, %s375_s10  ;;  %s295_s18 = int_to_ptr.vmem [resolvable:$true] %s294_s18 }
  0x12   : > { %s280_s26 = scalar_lea.sflag (!%p159_p10), [#allocation3], %s181_s8  ;;  %s444_s27 = scalar_lea.vmem (!%p159_p10), %s295_s18, 128 }
  0x13   : > { %p445_p12 = scmp.ne.s32.totalorder (!%p159_p10), %s295_s18, %s444_s27 }
  0x14   : > { %v522_v0 = vmov 0.0   ;;  %vm523_vm0 = vmmov 0   ;;  %v192_v1 = vld [vmem:[%s659_s2] sm:$0xff]  ;;  %s185_s28 = scalar_select %p184_p11, %s512_s15, 1  ;;  %v524_v2 = vmov 0   ;;  %vm203_vm1 = vcmask 1043456  }
  0x15   : > { %380 = vmatprep.subr.mxu0 %v522_v0  ;;  %382 = vmatprep.mubr.msk.f32.mxu0 %vm523_vm0, %v522_v0  ;;  %v191_v3 = vld [vmem:[%s658_s1] sm:$0xff]  ;;  %vm199_vm2 = vcmask 31744   ;;  %vm277_vm3 = vcmask 130048   ;;  %p446_p13 = pnand %p445_p12, %p586_p4  ;;  %s525_s15 = smov [#allocation2]  }
  0x16   : > { %443 = vset.pattern.permute.xlu0 %v524_v2  ;;  %s371_s29 = sshll.u32 %s185_s28, 2  ;;  %s448_s28 = sshll.u32 %s525_s15, 4  ;;  %s449_s28 = int_to_ptr.vmem [resolvable:$false] %s448_s28 }
  0x17   : > { %196 = vperm.xlu0 %443, %v192_v1   ;;  %s190_s5 = scalar_lea.vmem %s657_s0, %s371_s29  ;;  %p447_p0 = pneg %p446_p13 }
  0x18   : > { %v193_v4 = vld [vmem:[%s190_s5] sm:$0xf]  ;;  %s450_s29 = scalar_lea.vmem %s449_s28, 256  ;;  %p451_p1 = scmp.lt.s32.totalorder %s295_s18, %s449_s28 }
  0x19   : > { %381 = vmatpush3.msk.msra.mxu0 %vm203_vm1, %v193_v4  ;;  %p452_p2 = scmp.lt.s32.totalorder %s450_s29, %s444_s27 }
  0x1a   : > { %383 = vmatmul.mubr.msk.f32.vlgmr.msra.gmra.mxu0 %vm199_vm2, %v191_v3 }
  0x1b   : > { %p453_p3 = por %p452_p2, %p451_p1 }
  0x1d   : > { %p454_p5 = pnand %p453_p3, %p447_p0 }
  0x92   : > { %v197_v5 = vpop.permute.xlu0 %196 }
  0xda   : > { %v273_v6 = vpop.f32.mrf.mxu0 }
  0xdb   : > { %v274_v7 = vadd.f32 %v273_v6, %v197_v5 }
  0xdc   : > { %v384_v8 = vpop.f32.mrf.mxu0 }
  0xdd   : > { %278 = vst.msk [vmem:[%s183_s11] sm:$0xff] %vm277_vm3, %v274_v7 }
  0xde   : > { %457 = shalt.err (!%p454_p5)
}
  0xdf   : > { %s458_s30 = scalar_lea.hbm %s617_s23, 128  ;;  %s462_s6 = scalar_lea.hbm %s660_s3, 256 }
  0xe0   : > { %p459_p6 = scmp.ne.s32.totalorder %s617_s23, %s458_s30  ;;  %p463_p10 = scmp.lt.s32.totalorder %s617_s23, %s660_s3 }
  0xe1   : > { %p464_p11 = scmp.lt.s32.totalorder %s462_s6, %s458_s30 }
  0xe2   : > { %p460_p7 = pnand %p459_p6, %p586_p4 }
  0xe3   : > { %p465_p12 = por %p464_p11, %p463_p10 }
  0xe4   : > { %p461_p9 = pneg %p460_p7 }
  0xe6   : > { %p466_p13 = pnand %p465_p12, %p461_p9 }
  0xe8   : > { %469 = shalt.err (!%p466_p13)
}
  0xe9   : > { %385 = dma.vmem_to_hbm [thread:$0]  (%p586_p4), %s295_s18, 128, %s617_s23, %s280_s26  }
  0xea PF: > { %p391_p0 = scmp.ge.s32.totalorder %s520_s17, 2  ;;  %s306_s9 = sand.u32 1, %s500_s12  }
  0xeb   : > { %s307_s10 = scalar_lea.sflag [#allocation3], %s306_s9 }
  0xec   : > { %p388_p1 = pnand %p391_p0, %p593_p8 }
  0xee   : > { %p389_p2 = pneg %p388_p1 }
  0xf0   : > { %495 = dma.done.wait (%p389_p2), %s307_s10, 128  }
  0xf1   : > { %497 = vsyncadd (%p389_p2), %s307_s10, 4294967168  ;;  %s16_s17 = sadd.s32 1, %s520_s17   ;;  %s663_s12 = smov %s504_s13 }
  0xf2   : > { %p13_p3 = scmp.ge.s32.totalorder %s16_s17, 4   ;;  %s664_s13 = smov %s508_s14 }
  0xf3   : > { %s665_s14 = smov %s599_s25  ;;  %s666_s15 = smov %s516_s16 }
  0xf4   : > { %s667_s16 = smov %s669_s20  ;;  %15 = sbr.rel (!%p13_p3) target bundleno = 4 (0x4), region = 67 }
  0xf9   :  { %312 = vsyncpa [#allocation3], 1 }
  0xfa   :  { %314 = vsyncpa [#allocation3 + $0x1], 1 }

</bundles_post_ra>
